<compile_context>
chip_gen: v7x
topology: tpu7x:2x2x1
jax: 0.10.0
libtpu: 0.0.40
codegen_flags: <defaults>
</compile_context>

<pallas_src>
import functools

import jax
import jax.numpy as jnp
from jax.experimental import pallas as pl
from jax.experimental.pallas import tpu as pltpu

LANE = 128  # vreg lane width (use 256 for the padded N dims on v6e/v7x at large H)


def _round_up(x, m):
    return (x + m - 1) // m * m


def _choose_block_m(B):
    """Batch tile: multiple of 16 (bf16 sublane pack), capped at 128, and split so
    the batch grid has >= 2 parallel steps when B is large enough (v7x megacore)."""
    bm = min(128, _round_up(B, 16))
    if bm >= 32 and _round_up(B, bm) // bm < 2:
        bm = min(bm, max(16, _round_up(pl.cdiv(B, 2), 16)))
    return bm


def _plan(D_in, H_p, D_out_p, block_m):
    """Decide weight buffering and a VMEM limit from the actual resident footprint."""
    bf16, f32 = 2, 4
    w_bytes = (D_in * H_p + H_p * H_p + H_p * D_out_p) * bf16
    bias_bytes = (2 * H_p + D_out_p) * f32
    const_bytes = w_bytes + bias_bytes
    # Single-buffer the constant-index (VMEM-resident) weights once they are large
    # enough for the default 2-deep buffering to double a meaningful footprint.
    single_buffer = const_bytes > (2 << 20)
    wbuf = 1 if single_buffer else 2
    io_bytes = 2 * block_m * (D_in + D_out_p) * f32         # x/out tiles, double-buffered
    act_bytes = 6 * block_m * max(H_p, D_out_p) * f32       # in-kernel temporaries (generous)
    total = const_bytes * wbuf + io_bytes + act_bytes + (8 << 20)  # + headroom
    # 32 MiB floor is >= every chip's scoped default; cap below physical VMEM.
    vmem_limit = int(min(max(total, 32 << 20), 100 << 20))
    return single_buffer, vmem_limit


def _sigmoid_f32(z):
    # exp and the approximate reciprocal both execute on the EUP slot, which has
    # slack under the MXU matmuls; avoids jax.nn.sigmoid's VALU divide.
    return pl.reciprocal(1.0 + jnp.exp(-z), approx=True)


def fc_model_kernel(x_ref, w1_ref, b1_ref, w2_ref, b2_ref, w3_ref, b3_ref, out_ref):
    """Fused forward pass on one (block_m, D_in) tile of rows.

    h1 = sigmoid(x @ W1 + b1); h2 = sigmoid(h1 @ W2 + b2); y = h2 @ W3 + b3
    x arrives f32 and is cast to bf16 in-kernel; MXU accumulates in f32; bias-add
    and sigmoid stay f32.
    """
    x = x_ref[...].astype(jnp.bfloat16)          # free VPU cast, hidden under the MXU

    # Layer 1: input -> hidden, sigmoid
    z1 = jnp.dot(x, w1_ref[...], preferred_element_type=jnp.float32) + b1_ref[...]
    h1 = _sigmoid_f32(z1).astype(jnp.bfloat16)

    # Layer 2: hidden -> hidden, sigmoid
    # (padded lanes of h1 are sigmoid(0)=0.5, but W2's padded ROWS are zero,
    #  so they contribute nothing.)
    z2 = jnp.dot(h1, w2_ref[...], preferred_element_type=jnp.float32) + b2_ref[...]
    h2 = _sigmoid_f32(z2).astype(jnp.bfloat16)

    # Layer 3: hidden -> output (no activation)
    y = jnp.dot(h2, w3_ref[...], preferred_element_type=jnp.float32) + b3_ref[...]
    out_ref[...] = y.astype(out_ref.dtype)


@functools.partial(jax.jit, static_argnames=("d_out", "out_dtype"))
def fc_model_forward(x, params, *, d_out, out_dtype=jnp.float32):
    """Run the fused MLP.

    x: (B, D_in) f32 (passed unpadded in the feature dim).
    params: dict from pack_params() — weights pre-padded & pre-cast to bf16 (stored
    transposed as (in_features, out_features_padded)), biases f32 (1, dim_padded).
    """
    B, D_in = x.shape
    H_p = params["w1"].shape[1]
    D_out_p = params["w3"].shape[1]
    assert params["w1"].shape[0] == D_in, "x feature dim must match packed W1"

    block_m = _choose_block_m(B)
    B_p = _round_up(B, block_m)
    if B_p != B:
        x = jnp.pad(x, ((0, B_p - B), (0, 0)))   # only the batch dim is padded

    single_buffer, vmem_limit = _plan(D_in, H_p, D_out_p, block_m)

    def const_spec(shape):
        # Constant block index -> stays resident in VMEM across grid steps.
        if single_buffer:
            return pl.BlockSpec(shape, lambda i: (0, 0), pipeline_mode=pl.Buffered(1))
        return pl.BlockSpec(shape, lambda i: (0, 0))

    grid = (B_p // block_m,)

    out_p = pl.pallas_call(
        fc_model_kernel,
        out_shape=jax.ShapeDtypeStruct((B_p, D_out_p), out_dtype),
        grid_spec=pltpu.PrefetchScalarGridSpec(
            num_scalar_prefetch=0,
            grid=grid,
            in_specs=[
                # x: tile rows, full (unpadded) feature dim, f32
                pl.BlockSpec((block_m, D_in), lambda i: (i, 0)),
                const_spec((D_in, H_p)),      # W1 (bf16)
                const_spec((1, H_p)),         # b1 (f32)
                const_spec((H_p, H_p)),       # W2 (bf16)
                const_spec((1, H_p)),         # b2 (f32)
                const_spec((H_p, D_out_p)),   # W3 (bf16)
                const_spec((1, D_out_p)),     # b3 (f32)
            ],
            out_specs=pl.BlockSpec((block_m, D_out_p), lambda i: (i, 0)),
        ),
        compiler_params=pltpu.CompilerParams(
            dimension_semantics=("parallel",),
            vmem_limit_bytes=vmem_limit,
        ),
    )(x, params["w1"], params["b1"], params["w2"], params["b2"],
      params["w3"], params["b3"])

    return out_p[:B, :d_out]


def init_params(key, input_dim, hidden_dim, output_dim, dtype=jnp.float32):
    """Deterministic init mimicking nn.Linear's U(-1/sqrt(fan_in), 1/sqrt(fan_in)).
    Weights are stored transposed: (in_features, out_features); biases (1, dim)."""
    ks = jax.random.split(key, 6)

    def uniform(k, shape, fan_in):
        bound = 1.0 / jnp.sqrt(fan_in)
        return jax.random.uniform(k, shape, dtype=dtype, minval=-bound, maxval=bound)

    w1 = uniform(ks[0], (input_dim, hidden_dim), input_dim)
    b1 = uniform(ks[1], (1, hidden_dim), input_dim)
    w2 = uniform(ks[2], (hidden_dim, hidden_dim), hidden_dim)
    b2 = uniform(ks[3], (1, hidden_dim), hidden_dim)
    w3 = uniform(ks[4], (hidden_dim, output_dim), hidden_dim)
    b3 = uniform(ks[5], (1, output_dim), hidden_dim)
    return w1, b1, w2, b2, w3, b3


def pack_params(w1, b1, w2, b2, w3, b3, *, lane=LANE):
    """One-time pad + cast of the parameters (done at init, NOT per forward call).

    Hidden/output dims are zero-padded to lane multiples; weight ROWS beyond the
    true hidden dim are zero so the sigmoid(0)=0.5 values in padded hidden lanes
    never leak into real outputs; bias padding is zero.
    """
    D_in, H = w1.shape
    D_out = w3.shape[1]
    H_p = _round_up(H, lane)
    D_out_p = _round_up(D_out, lane)

    def pad2(a, rows, cols):
        return jnp.pad(a, ((0, rows - a.shape[0]), (0, cols - a.shape[1])))

    return dict(
        w1=pad2(w1, D_in, H_p).astype(jnp.bfloat16),
        b1=pad2(b1, 1, H_p).astype(jnp.float32),
        w2=pad2(w2, H_p, H_p).astype(jnp.bfloat16),
        b2=pad2(b2, 1, H_p).astype(jnp.float32),
        w3=pad2(w3, H_p, D_out_p).astype(jnp.bfloat16),
        b3=pad2(b3, 1, D_out_p).astype(jnp.float32),
    )


def fc_model_ref_f32(x, w1, b1, w2, b2, w3, b3):
    """Pure-JAX f32 reference (matches the PyTorch module's math)."""
    h1 = jax.nn.sigmoid(x @ w1 + b1)
    h2 = jax.nn.sigmoid(h1 @ w2 + b2)
    return h2 @ w3 + b3


def fc_model_ref_bf16(x, w1, b1, w2, b2, w3, b3):
    """Reference emulating the kernel's bf16-in / f32-accumulate pipeline."""
    bf, f32 = jnp.bfloat16, jnp.float32
    q = lambda a: a.astype(bf).astype(f32)
    h1 = jax.nn.sigmoid(q(x) @ q(w1) + b1)
    h2 = jax.nn.sigmoid(q(h1) @ q(w2) + b2)
    return q(h2) @ q(w3) + b3


if __name__ == "__main__":
    key = jax.random.PRNGKey(0)
    k_x, k_p = jax.random.split(key)

    batch = 8
    input_dim = 16
    hidden_dim = 32
    output_dim = 4

    x = jax.random.normal(k_x, (batch, input_dim), dtype=jnp.float32)
    raw_params = init_params(k_p, input_dim, hidden_dim, output_dim)

    # One-time pad + bf16 cast (hoisted out of the per-call hot path).
    packed = pack_params(*raw_params)
    packed = jax.tree_util.tree_map(jax.block_until_ready, packed)

    y = fc_model_forward(x, packed, d_out=output_dim)
    y = jax.block_until_ready(y)

    assert y.shape == (batch, output_dim)

    # Check vs a reference emulating the kernel's bf16 pipeline (approx-reciprocal
    # sigmoid adds << bf16 rounding error).
    y_bf16_ref = fc_model_ref_bf16(x, *raw_params)
    assert jnp.allclose(y, y_bf16_ref, atol=3e-2, rtol=3e-2), \
        "mismatch vs bf16-emulated reference"

    # Looser check vs the exact f32 module semantics.
    y_f32_ref = fc_model_ref_f32(x, *raw_params)
    assert jnp.allclose(y, y_f32_ref, atol=8e-2, rtol=8e-2), \
        "mismatch vs f32 reference"

    print("KERNEL_OK")
</pallas_src>

<mosaic_0001>
module attributes {stable_mosaic.version = 11 : i64} {
  func.func @fc_model_kernel(%arg0: i32, %arg1: memref<16x16xf32, #tpu.memory_space<vmem>>, %arg2: memref<16x128xbf16, #tpu.memory_space<vmem>>, %arg3: memref<1x128xf32, #tpu.memory_space<vmem>>, %arg4: memref<128x128xbf16, #tpu.memory_space<vmem>>, %arg5: memref<1x128xf32, #tpu.memory_space<vmem>>, %arg6: memref<128x128xbf16, #tpu.memory_space<vmem>>, %arg7: memref<1x128xf32, #tpu.memory_space<vmem>>, %arg8: memref<16x128xf32, #tpu.memory_space<vmem>>) attributes {dimension_semantics = [#tpu.dimension_semantics<parallel>], iteration_bounds = array<i64: 1>, scalar_prefetch = 0 : i64, scratch_operands = 0 : i64, tpu.core_type = #tpu.core_type<tc>, window_params = [{transform_indices = @transform_0, window_bounds = array<i64: 16, 16>}, {pipeline_mode = #tpu.pipeline_mode<synchronous>, transform_indices = @transform_1, window_bounds = array<i64: 16, 128>}, {pipeline_mode = #tpu.pipeline_mode<synchronous>, transform_indices = @transform_2, window_bounds = array<i64: 1, 128>}, {pipeline_mode = #tpu.pipeline_mode<synchronous>, transform_indices = @transform_3, window_bounds = array<i64: 128, 128>}, {pipeline_mode = #tpu.pipeline_mode<synchronous>, transform_indices = @transform_4, window_bounds = array<i64: 1, 128>}, {pipeline_mode = #tpu.pipeline_mode<synchronous>, transform_indices = @transform_5, window_bounds = array<i64: 128, 128>}, {pipeline_mode = #tpu.pipeline_mode<synchronous>, transform_indices = @transform_6, window_bounds = array<i64: 1, 128>}, {transform_indices = @transform_7, window_bounds = array<i64: 16, 128>}]} {
    %c0 = arith.constant 0 : index
    %c0_0 = arith.constant 0 : index
    %0 = vector.load %arg1[%c0, %c0_0] : memref<16x16xf32, #tpu.memory_space<vmem>>, vector<16x16xf32>
    %1 = arith.truncf %0 : vector<16x16xf32> to vector<16x16xbf16>
    %c0_1 = arith.constant 0 : index
    %c0_2 = arith.constant 0 : index
    %2 = vector.load %arg2[%c0_1, %c0_2] : memref<16x128xbf16, #tpu.memory_space<vmem>>, vector<16x128xbf16>
    %cst = arith.constant dense<0.000000e+00> : vector<16x128xf32>
    %3 = tpu.matmul %1, %2, %cst {dimension_numbers = #tpu.dot_dimension_numbers<[1], [0], [0], [1], [0, 0, 1, 1], [], []>} : vector<16x16xbf16>, vector<16x128xbf16>, vector<16x128xf32> -> vector<16x128xf32>
    %c0_3 = arith.constant 0 : index
    %c0_4 = arith.constant 0 : index
    %4 = vector.load %arg3[%c0_3, %c0_4] : memref<1x128xf32, #tpu.memory_space<vmem>>, vector<1x128xf32>
    %5 = vector.broadcast %4 : vector<1x128xf32> to vector<16x128xf32>
    %6 = arith.addf %3, %5 : vector<16x128xf32>
    %cst_5 = arith.constant 0.000000e+00 : f32
    %7 = vector.broadcast %cst_5 : f32 to vector<16x128xf32>
    %8 = arith.subf %7, %6 : vector<16x128xf32>
    %9 = math.exp %8 : vector<16x128xf32>
    %cst_6 = arith.constant 1.000000e+00 : f32
    %10 = vector.broadcast %cst_6 : f32 to vector<16x128xf32>
    %11 = arith.addf %10, %9 : vector<16x128xf32>
    %12 = tpu.reciprocal %11 {approx = true} : vector<16x128xf32> -> vector<16x128xf32>
    %13 = arith.truncf %12 : vector<16x128xf32> to vector<16x128xbf16>
    %c0_7 = arith.constant 0 : index
    %c0_8 = arith.constant 0 : index
    %14 = vector.load %arg4[%c0_7, %c0_8] : memref<128x128xbf16, #tpu.memory_space<vmem>>, vector<128x128xbf16>
    %cst_9 = arith.constant dense<0.000000e+00> : vector<16x128xf32>
    %15 = tpu.matmul %13, %14, %cst_9 {dimension_numbers = #tpu.dot_dimension_numbers<[1], [0], [0], [1], [0, 0, 1, 1], [], []>} : vector<16x128xbf16>, vector<128x128xbf16>, vector<16x128xf32> -> vector<16x128xf32>
    %c0_10 = arith.constant 0 : index
    %c0_11 = arith.constant 0 : index
    %16 = vector.load %arg5[%c0_10, %c0_11] : memref<1x128xf32, #tpu.memory_space<vmem>>, vector<1x128xf32>
    %17 = vector.broadcast %16 : vector<1x128xf32> to vector<16x128xf32>
    %18 = arith.addf %15, %17 : vector<16x128xf32>
    %cst_12 = arith.constant 0.000000e+00 : f32
    %19 = vector.broadcast %cst_12 : f32 to vector<16x128xf32>
    %20 = arith.subf %19, %18 : vector<16x128xf32>
    %21 = math.exp %20 : vector<16x128xf32>
    %cst_13 = arith.constant 1.000000e+00 : f32
    %22 = vector.broadcast %cst_13 : f32 to vector<16x128xf32>
    %23 = arith.addf %22, %21 : vector<16x128xf32>
    %24 = tpu.reciprocal %23 {approx = true} : vector<16x128xf32> -> vector<16x128xf32>
    %25 = arith.truncf %24 : vector<16x128xf32> to vector<16x128xbf16>
    %c0_14 = arith.constant 0 : index
    %c0_15 = arith.constant 0 : index
    %26 = vector.load %arg6[%c0_14, %c0_15] : memref<128x128xbf16, #tpu.memory_space<vmem>>, vector<128x128xbf16>
    %cst_16 = arith.constant dense<0.000000e+00> : vector<16x128xf32>
    %27 = tpu.matmul %25, %26, %cst_16 {dimension_numbers = #tpu.dot_dimension_numbers<[1], [0], [0], [1], [0, 0, 1, 1], [], []>} : vector<16x128xbf16>, vector<128x128xbf16>, vector<16x128xf32> -> vector<16x128xf32>
    %c0_17 = arith.constant 0 : index
    %c0_18 = arith.constant 0 : index
    %28 = vector.load %arg7[%c0_17, %c0_18] : memref<1x128xf32, #tpu.memory_space<vmem>>, vector<1x128xf32>
    %29 = vector.broadcast %28 : vector<1x128xf32> to vector<16x128xf32>
    %30 = arith.addf %27, %29 : vector<16x128xf32>
    %c0_19 = arith.constant 0 : index
    %c0_20 = arith.constant 0 : index
    %31 = vector.load %arg8[%c0_19, %c0_20] : memref<16x128xf32, #tpu.memory_space<vmem>>, vector<16x128xf32>
    tpu.vector_store %arg8[%c0_19, %c0_20], %30 {strides = array<i32>} : memref<16x128xf32, #tpu.memory_space<vmem>>, vector<16x128xf32>,
    return
  }
  func.func @transform_0(%arg0: i32) -> (i32, i32) {
    %c0_i32 = arith.constant 0 : i32
    %c0_i32_0 = arith.constant 0 : i32
    return %arg0, %c0_i32 : i32, i32
  }
  func.func @transform_1(%arg0: i32) -> (i32, i32) {
    %c0_i32 = arith.constant 0 : i32
    %c0_i32_0 = arith.constant 0 : i32
    %c0_i32_1 = arith.constant 0 : i32
    return %c0_i32, %c0_i32_0 : i32, i32
  }
  func.func @transform_2(%arg0: i32) -> (i32, i32) {
    %c0_i32 = arith.constant 0 : i32
    %c0_i32_0 = arith.constant 0 : i32
    %c0_i32_1 = arith.constant 0 : i32
    return %c0_i32, %c0_i32_0 : i32, i32
  }
  func.func @transform_3(%arg0: i32) -> (i32, i32) {
    %c0_i32 = arith.constant 0 : i32
    %c0_i32_0 = arith.constant 0 : i32
    %c0_i32_1 = arith.constant 0 : i32
    return %c0_i32, %c0_i32_0 : i32, i32
  }
  func.func @transform_4(%arg0: i32) -> (i32, i32) {
    %c0_i32 = arith.constant 0 : i32
    %c0_i32_0 = arith.constant 0 : i32
    %c0_i32_1 = arith.constant 0 : i32
    return %c0_i32, %c0_i32_0 : i32, i32
  }
  func.func @transform_5(%arg0: i32) -> (i32, i32) {
    %c0_i32 = arith.constant 0 : i32
    %c0_i32_0 = arith.constant 0 : i32
    %c0_i32_1 = arith.constant 0 : i32
    return %c0_i32, %c0_i32_0 : i32, i32
  }
  func.func @transform_6(%arg0: i32) -> (i32, i32) {
    %c0_i32 = arith.constant 0 : i32
    %c0_i32_0 = arith.constant 0 : i32
    %c0_i32_1 = arith.constant 0 : i32
    return %c0_i32, %c0_i32_0 : i32, i32
  }
  func.func @transform_7(%arg0: i32) -> (i32, i32) {
    %c0_i32 = arith.constant 0 : i32
    %c0_i32_0 = arith.constant 0 : i32
    return %arg0, %c0_i32 : i32, i32
  }
}

</mosaic_0001>

<bundles_post_ra>
// kernel: fc_model_forward.1
= control target key start
LH: loop header
LB: loop body
LE: loop exit
PB: predicated region body
PF: predicated region fallthrough
CT: control target
= control target key end

     0   :  { %12 = vsyncpa [#allocation3], 0  ;;  %s660_s0 = inlined_call_operand.vmem [shape: f32[16,16], index: 0, kind: input, shape index: {}]   ;;  %s661_s1 = inlined_call_operand.vmem [shape: bf16[16,128], index: 1, kind: input, shape index: {}]   ;;  %s662_s2 = inlined_call_operand.vmem [shape: f32[1,128], index: 2, kind: input, shape index: {}]   ;;  %s663_s3 = inlined_call_operand.hbm [shape: bf16[128,128], index: 3, kind: input, shape index: {}]   ;;  %s664_s4 = inlined_call_operand.vmem [shape: f32[1,128], index: 4, kind: input, shape index: {}]   ;;  %s665_s5 = inlined_call_operand.hbm [shape: bf16[128,128], index: 5, kind: input, shape index: {}]   ;;  %s666_s6 = inlined_call_operand.vmem [shape: f32[1,128], index: 6, kind: input, shape index: {}]   ;;  %s667_s7 = inlined_call_operand.vmem [shape: f32[16,128], index: 7, kind: output, shape index: {}]  }
   0x1   :  { %13 = vsyncpa [#allocation5], 0  ;;  %s546_s24 = smov [#allocation2]   ;;  %s498_s28 = scalar_lea.hbm %s663_s3, 1024 }
   0x2   :  { %s25_s25 = sshll.u32 %s546_s24, 4  ;;  %p499_p0 = scmp.ne.s32.totalorder %s663_s3, %s498_s28  ;;  %s26_s25 = int_to_ptr.vmem [resolvable:$true] %s25_s25 }
   0x3   :  { %p502_p1 = scmp.lt.u32.totalorder %s498_s28, %s663_s3 }
   0x5   :  { %p504_p2 = pnand %p502_p1, %p499_p0 }
   0x7   :  { %507 = shalt.err (!%p504_p2)
}
   0x8   :  { %s508_s10 = scalar_lea.vmem %s26_s25, 1024  ;;  %p513_p4 = scmp.lt.s32.totalorder %s26_s25, %s26_s25 }
   0x9   :  { %p509_p3 = scmp.ne.s32.totalorder %s26_s25, %s508_s10  ;;  %p514_p5 = scmp.lt.s32.totalorder %s508_s10, %s508_s10 }
   0xb   :  { %p515_p6 = por %p514_p5, %p513_p4 }
   0xd   :  { %p516_p7 = pnand %p515_p6, %p509_p3 }
   0xf   :  { %519 = shalt.err (!%p516_p7)
}
  0x10   :  { %s547_s11 = smov 64   ;;  %s548_s12 = smov 4  }
  0x11   :  { %31 = dma.hbm_to_vmem [thread:$0]  %s663_s3, 1024, %s26_s25, [#allocation3], %s547_s11, %s547_s11, %s548_s12  }
  0x12   :  { %s549_s15 = smov [#allocation4]   ;;  %s520_s19 = scalar_lea.hbm %s665_s5, 1024 }
  0x13   :  { %s39_s16 = sshll.u32 %s549_s15, 4  ;;  %p521_p8 = scmp.ne.s32.totalorder %s665_s5, %s520_s19  ;;  %s40_s16 = int_to_ptr.vmem [resolvable:$true] %s39_s16 }
  0x14   :  { %p524_p9 = scmp.lt.u32.totalorder %s520_s19, %s665_s5 }
  0x16   :  { %p526_p10 = pnand %p524_p9, %p521_p8 }
  0x18   :  { %529 = shalt.err (!%p526_p10)
}
  0x19   :  { %s530_s24 = scalar_lea.vmem %s40_s16, 1024  ;;  %p535_p12 = scmp.lt.s32.totalorder %s40_s16, %s40_s16 }
  0x1a   :  { %p531_p11 = scmp.ne.s32.totalorder %s40_s16, %s530_s24  ;;  %p536_p13 = scmp.lt.s32.totalorder %s530_s24, %s530_s24 }
  0x1c   :  { %p537_p0 = por %p536_p13, %p535_p12 }
  0x1e   :  { %p538_p1 = pnand %p537_p0, %p531_p11 }
  0x20   :  { %541 = shalt.err (!%p538_p1)
}
  0x21   :  { %45 = dma.hbm_to_vmem [thread:$0]  %s665_s5, 1024, %s40_s16, [#allocation5], %s547_s11, %s547_s11, %s548_s12  }
  0x22   :  { %542 = dma.done.wait [#allocation3], 1024  }
  0x23   :  { %543 = vsyncadd [#allocation3], 4294966272 }
  0x24   :  { %544 = dma.done.wait [#allocation5], 1024  }
  0x25   :  { %545 = vsyncadd [#allocation5], 4294966272  ;;  %v550_v0 = vmov 0.0   ;;  %vm551_vm0 = vmmov 0   ;;  %v465_v1 = vld [vmem:[%s661_s1] sm:$0xff]   ;;  %v56_v3 = vld [vmem:[%s660_s0 + $0x8] sm:$0xff] }
  0x26   :  { %413 = vmatprep.subr.bf16.mxu0 %v550_v0  ;;  %415 = vmatprep.mubr.msk.bf16.mxu0 %vm551_vm0, %v550_v0  ;;  %v55_v2 = vld [vmem:[%s660_s0] sm:$0xff]  ;;  %vm73_vm1 = vcmask 130048   ;;  %v467_v6 = vld [vmem:[#allocation2 + $0x8] sm:$0xff]   ;;  %v468_v7 = vld [vmem:[#allocation2 + $0x10] sm:$0xff]  }
  0x27   :  { %419 = vmatprep.subr.bf16.mxu1 %v550_v0  ;;  %435 = vmatprep.mubr.msk.bf16.mxu1 %vm551_vm0, %v550_v0  ;;  %v57_v4 = vpack.c.bf16 %v56_v3, %v55_v2  ;;  %v466_v5 = vld [vmem:[#allocation2] sm:$0xff]   ;;  %v469_v8 = vld [vmem:[#allocation2 + $0x18] sm:$0xff]   ;;  %v471_v10 = vld [vmem:[#allocation2 + $0x28] sm:$0xff]  }
  0x28   :  { %414 = vmatpush3.bf16.msra.mxu0 %v465_v1  ;;  %420 = vmatpush3.bf16.msra.mxu1 %v466_v5  ;;  %v470_v9 = vld [vmem:[#allocation2 + $0x20] sm:$0xff]   ;;  %v472_v11 = vld [vmem:[#allocation2 + $0x30] sm:$0xff]   ;;  %v473_v12 = vld [vmem:[#allocation2 + $0x38] sm:$0xff]  }
  0x29   :  { %439 = vmatprep.subr.bf16.mxu0 %v550_v0  ;;  %421 = vmatprep.subr.bf16.mxu1 %v550_v0  ;;  %v372_v13 = vld [vmem:[%s662_s2] ss:$0 sm:$0xff]  ;;  %v475_v32 = vld [vmem:[#allocation4 + $0x8] sm:$0xff]   ;;  %v476_v33 = vld [vmem:[#allocation4 + $0x10] sm:$0xff]  }
  0x2a   :  { %v474_v31 = vld [vmem:[#allocation4] sm:$0xff]   ;;  %v477_v34 = vld [vmem:[#allocation4 + $0x18] sm:$0xff]   ;;  %v479_v36 = vld [vmem:[#allocation4 + $0x28] sm:$0xff]  }
  0x2b   :  { %416 = vmatmul.mubr.msk.bf16.vlgmr.msra.gmra.mrb[0].mxu0 %vm73_vm1, %v57_v4  ;;  %v478_v35 = vld [vmem:[#allocation4 + $0x20] sm:$0xff]   ;;  %v480_v37 = vld [vmem:[#allocation4 + $0x30] sm:$0xff]   ;;  %v481_v38 = vld [vmem:[#allocation4 + $0x38] sm:$0xff]  }
  0x2c   :  { %455 = vmatprep.mubr.msk.bf16.mxu0 %vm551_vm0, %v550_v0  ;;  %422 = vmatpush3.bf16.msra.mxu1 %v467_v6  ;;  %v375_v39 = vld [vmem:[%s664_s4] ss:$0 sm:$0xff] }
  0x2d   :  { %423 = vmatprep.subr.bf16.mxu1 %v550_v0  ;;  %440 = vmatpush3.bf16.msra.mxu0 %v474_v31  ;;  %v384_v57 = vld [vmem:[%s666_s6] ss:$0 sm:$0xff] }
  0x2e   :  { %441 = vmatprep.subr.bf16.mxu0 %v550_v0 }
  0x30   :  { %424 = vmatpush3.bf16.msra.mxu1 %v468_v7 }
  0x31   :  { %425 = vmatprep.subr.bf16.mxu1 %v550_v0  ;;  %442 = vmatpush3.bf16.msra.mxu0 %v475_v32 }
  0x32   :  { %443 = vmatprep.subr.bf16.mxu0 %v550_v0 }
  0x34   :  { %426 = vmatpush3.bf16.msra.mxu1 %v469_v8 }
  0x35   :  { %427 = vmatprep.subr.bf16.mxu1 %v550_v0  ;;  %444 = vmatpush3.bf16.msra.mxu0 %v476_v33 }
  0x36   :  { %445 = vmatprep.subr.bf16.mxu0 %v550_v0 }
  0x38   :  { %428 = vmatpush3.bf16.msra.mxu1 %v470_v9 }
  0x39   :  { %429 = vmatprep.subr.bf16.mxu1 %v550_v0  ;;  %446 = vmatpush3.bf16.msra.mxu0 %v477_v34 }
  0x3a   :  { %447 = vmatprep.subr.bf16.mxu0 %v550_v0 }
  0x3c   :  { %430 = vmatpush3.bf16.msra.mxu1 %v471_v10 }
  0x3d   :  { %431 = vmatprep.subr.bf16.mxu1 %v550_v0  ;;  %448 = vmatpush3.bf16.msra.mxu0 %v478_v35 }
  0x3e   :  { %449 = vmatprep.subr.bf16.mxu0 %v550_v0 }
  0x40   :  { %432 = vmatpush3.bf16.msra.mxu1 %v472_v11 }
  0x41   :  { %433 = vmatprep.subr.bf16.mxu1 %v550_v0  ;;  %450 = vmatpush3.bf16.msra.mxu0 %v479_v36 }
  0x42   :  { %451 = vmatprep.subr.bf16.mxu0 %v550_v0 }
  0x44   :  { %434 = vmatpush3.bf16.msra.mxu1 %v473_v12 }
  0x45   :  { %452 = vmatpush3.bf16.msra.mxu0 %v480_v37 }
  0x46   :  { %453 = vmatprep.subr.bf16.mxu0 %v550_v0 }
  0x49   :  { %454 = vmatpush3.bf16.msra.mxu0 %v481_v38 }
  0xfe   :  { %v111_v14 = vpop.f32.mrb[0].mxu0 }
  0xff   :  { %v112_v15 = vadd.f32 %v372_v13, %v111_v14  ;;  %v417_v16 = vpop.f32.mrb[1].mxu0 }
 0x100   :  { %v114_v17 = vpop.f32.mrb[2].mxu0 }
 0x101   :  { %v118_v18 = vsub.f32 0.0, %v112_v15  ;;  %v115_v19 = vadd.f32 %v372_v13, %v114_v17  ;;  %v418_v20 = vpop.f32.mrb[3].mxu0 }
 0x103   :  { %v120_v21 = vmul.f32 1.442695, %v118_v18  ;;  %v119_v22 = vsub.f32 0.0, %v115_v19 }
 0x105   :  { %482 = vpow2.f32 %v120_v21  ;;  %v122_v23 = vmul.f32 1.442695, %v119_v22 }
 0x107   :  { %484 = vpow2.f32 %v122_v23 }
 0x10f   :  { %v483_v24 = vpop.eup %482 }
 0x110   :  { %v124_v25 = vadd.f32 1.0, %v483_v24 }
 0x111   :  { %v485_v26 = vpop.eup %484 }
 0x112   :  { %v125_v27 = vadd.f32 1.0, %v485_v26  ;;  %486 = vrcp.f32 %v124_v25 }
 0x114   :  { %488 = vrcp.f32 %v125_v27 }
 0x11c   :  { %v487_v28 = vpop.eup %486 }
 0x11e   :  { %v489_v29 = vpop.eup %488 }
 0x11f   :  { %v128_v30 = vpack.c.bf16 %v489_v29, %v487_v28 }
 0x121   :  { %436 = vmatmul.mubr.bf16.vlgmr.msra.gmra.mrb[0].mxu1 %v128_v30 }
 0x1f4   :  { %v234_v40 = vpop.f32.mrb[0].mxu1 }
 0x1f5   :  { %v235_v41 = vadd.f32 %v375_v39, %v234_v40  ;;  %v437_v42 = vpop.f32.mrb[1].mxu1 }
 0x1f6   :  { %v237_v43 = vpop.f32.mrb[2].mxu1 }
 0x1f7   :  { %v241_v44 = vsub.f32 0.0, %v235_v41  ;;  %v238_v45 = vadd.f32 %v375_v39, %v237_v43  ;;  %v438_v46 = vpop.f32.mrb[3].mxu1 }
 0x1f9   :  { %v243_v47 = vmul.f32 1.442695, %v241_v44  ;;  %v242_v48 = vsub.f32 0.0, %v238_v45 }
 0x1fb   :  { %490 = vpow2.f32 %v243_v47  ;;  %v245_v49 = vmul.f32 1.442695, %v242_v48 }
 0x1fd   :  { %492 = vpow2.f32 %v245_v49 }
 0x205   :  { %v491_v50 = vpop.eup %490 }
 0x206   :  { %v247_v51 = vadd.f32 1.0, %v491_v50 }
 0x207   :  { %v493_v52 = vpop.eup %492 }
 0x208   :  { %v248_v53 = vadd.f32 1.0, %v493_v52  ;;  %494 = vrcp.f32 %v247_v51 }
 0x20a   :  { %496 = vrcp.f32 %v248_v53 }
 0x212   :  { %v495_v54 = vpop.eup %494 }
 0x214   :  { %v497_v55 = vpop.eup %496 }
 0x215   :  { %v251_v56 = vpack.c.bf16 %v497_v55, %v495_v54 }
 0x217   :  { %456 = vmatmul.mubr.bf16.vlgmr.msra.gmra.mrb[4].mxu0 %v251_v56 }
 0x2ea   :  { %v357_v58 = vpop.f32.mrb[4].mxu0 }
 0x2eb   :  { %v358_v59 = vadd.f32 %v384_v57, %v357_v58  ;;  %v457_v60 = vpop.f32.mrb[5].mxu0 }
 0x2ec   :  { %v360_v61 = vpop.f32.mrb[6].mxu0 }
 0x2ed   :  { %364 = vst [vmem:[%s667_s7] sm:$0xff] %v358_v59  ;;  %v361_v62 = vadd.f32 %v384_v57, %v360_v61  ;;  %v458_v63 = vpop.f32.mrb[7].mxu0 }
 0x2ef   :  { %365 = vst [vmem:[%s667_s7 + $0x8] sm:$0xff] %v361_v62 }
 0x2f0   :  { %370 = vsyncpa [#allocation3], 1 }
 0x2f1   :  { %371 = vsyncpa [#allocation5], 1 }

</bundles_post_ra>
